<compile_context>
chip_gen: v7x
topology: tpu7x:2x2x1
jax: 0.10.0
libtpu: 0.0.40
codegen_flags: <defaults>
</compile_context>

<pallas_src>
import jax
import jax.numpy as jnp
from jax.experimental import pallas as pl
from jax.experimental.pallas import tpu as pltpu


def _queries_gen_kernel(x_ref, wb_ref, o_ref):
    # x_ref: (N, 1), wb_ref: (2, D) with row 0 = W[:, 0], row 1 = bias, o_ref: (N, D)
    xv = x_ref[...]          # (N, 1)
    wv = wb_ref[0:1, :]      # (1, D)
    bv = wb_ref[1:2, :]      # (1, D)
    # Outer-product broadcast + bias + ReLU — pure VPU, computed exactly once.
    o_ref[...] = jnp.maximum(xv * wv + bv, 0.0).astype(o_ref.dtype)
    # TODO(synk): training-mode dropout (p=0.1) omitted; eval-mode dropout is identity.


def decoder_queries_gen(bs, x, weight, bias, all_zeros=False):
    """x: (1, N) f32; weight: (in_dim, 1); bias: (in_dim,) -> (bs, N, in_dim)."""
    if all_zeros:
        # PyTorch all_zeros=True branch: pass-through.
        return x

    N = x.shape[1]
    D = weight.shape[0]
    # Keep the lane (last) axis a multiple of 128 for unmasked, lane-dense stores.
    D_pad = ((D + 127) // 128) * 128

    x_col = x.reshape(N, 1).astype(jnp.float32)                       # (N, 1)
    wb = jnp.zeros((2, D_pad), jnp.float32)
    wb = wb.at[0, :D].set(weight.reshape(D).astype(jnp.float32))      # W[:, 0] on lanes
    wb = wb.at[1, :D].set(bias.reshape(D).astype(jnp.float32))        # bias on lanes

    out_nd = pl.pallas_call(
        _queries_gen_kernel,
        out_shape=jax.ShapeDtypeStruct((N, D_pad), jnp.float32),
        grid_spec=pltpu.PrefetchScalarGridSpec(
            num_scalar_prefetch=0,
            grid=(1,),  # single step: compute the shared (N, D) tile once
            in_specs=[
                pl.BlockSpec((N, 1), lambda i: (0, 0)),
                pl.BlockSpec((2, D_pad), lambda i: (0, 0)),
            ],
            out_specs=pl.BlockSpec((N, D_pad), lambda i: (0, 0)),
        ),
        compiler_params=pltpu.CompilerParams(
            dimension_semantics=("arbitrary",),
        ),
    )(x_col, wb)

    if D_pad != D:
        out_nd = out_nd[:, :D]

    # Batch expansion happens outside the kernel; XLA fuses/materializes this
    # broadcast into the consumer instead of the kernel writing bs identical tiles.
    return jnp.broadcast_to(out_nd[None, :, :], (bs, N, D))


if __name__ == "__main__":
    # Small shapes consistent with the module: in_dim=128, N=8 query slots, bs=2.
    bs = 2
    N = 8
    in_dim = 128

    key = jax.random.PRNGKey(0)
    kx, kw, kb = jax.random.split(key, 3)

    # Parameter init mimicking nn.Linear(1, in_dim): uniform(-1, 1) (fan_in = 1).
    weight = jax.random.uniform(kw, (in_dim, 1), jnp.float32, minval=-1.0, maxval=1.0)
    bias = jax.random.uniform(kb, (in_dim,), jnp.float32, minval=-1.0, maxval=1.0)

    x = jax.random.normal(kx, (1, N), jnp.float32)

    out = decoder_queries_gen(bs, x, weight, bias)
    out = jax.block_until_ready(out)

    # Pure-JAX reference: ReLU(x[:, :, None] * W^T + b), broadcast over batch.
    x_exp = jnp.broadcast_to(x, (bs, N))[:, :, None]                   # (bs, N, 1)
    ref = jnp.maximum(x_exp * weight[:, 0][None, None, :] + bias, 0.0)
    assert out.shape == (bs, N, in_dim)
    assert jnp.allclose(out, ref, atol=1e-5, rtol=1e-5)

    print("KERNEL_OK")
</pallas_src>

<mosaic_0001>
module attributes {stable_mosaic.version = 11 : i64} {
  func.func @_queries_gen_kernel(%arg0: i32, %arg1: memref<8x1xf32, #tpu.memory_space<vmem>>, %arg2: memref<2x128xf32, #tpu.memory_space<vmem>>, %arg3: memref<8x128xf32, #tpu.memory_space<vmem>>) attributes {dimension_semantics = [#tpu.dimension_semantics<arbitrary>], iteration_bounds = array<i64: 1>, scalar_prefetch = 0 : i64, scratch_operands = 0 : i64, tpu.core_type = #tpu.core_type<tc>, window_params = [{pipeline_mode = #tpu.pipeline_mode<synchronous>, transform_indices = @transform_0, window_bounds = array<i64: 8, 1>}, {pipeline_mode = #tpu.pipeline_mode<synchronous>, transform_indices = @transform_1, window_bounds = array<i64: 2, 128>}, {pipeline_mode = #tpu.pipeline_mode<synchronous>, transform_indices = @transform_2, window_bounds = array<i64: 8, 128>}]} {
    %c0 = arith.constant 0 : index
    %c0_0 = arith.constant 0 : index
    %0 = vector.load %arg1[%c0, %c0_0] : memref<8x1xf32, #tpu.memory_space<vmem>>, vector<8x1xf32>
    %c0_1 = arith.constant 0 : index
    %c0_2 = arith.constant 0 : index
    %1 = vector.load %arg2[%c0_1, %c0_2] : memref<2x128xf32, #tpu.memory_space<vmem>>, vector<1x128xf32>
    %c1 = arith.constant 1 : index
    %c0_3 = arith.constant 0 : index
    %2 = vector.load %arg2[%c1, %c0_3] : memref<2x128xf32, #tpu.memory_space<vmem>>, vector<1x128xf32>
    %3 = vector.broadcast %0 : vector<8x1xf32> to vector<8x128xf32>
    %4 = vector.broadcast %1 : vector<1x128xf32> to vector<8x128xf32>
    %5 = arith.mulf %3, %4 : vector<8x128xf32>
    %6 = vector.broadcast %2 : vector<1x128xf32> to vector<8x128xf32>
    %7 = arith.addf %5, %6 : vector<8x128xf32>
    %cst = arith.constant 0.000000e+00 : f32
    %8 = vector.broadcast %cst : f32 to vector<8x128xf32>
    %9 = arith.maximumf %7, %8 : vector<8x128xf32>
    %c0_4 = arith.constant 0 : index
    %c0_5 = arith.constant 0 : index
    %10 = vector.load %arg3[%c0_4, %c0_5] : memref<8x128xf32, #tpu.memory_space<vmem>>, vector<8x128xf32>
    tpu.vector_store %arg3[%c0_4, %c0_5], %9 {strides = array<i32>} : memref<8x128xf32, #tpu.memory_space<vmem>>, vector<8x128xf32>,
    return
  }
  func.func @transform_0(%arg0: i32) -> (i32, i32) {
    %c0_i32 = arith.constant 0 : i32
    %c0_i32_0 = arith.constant 0 : i32
    %c0_i32_1 = arith.constant 0 : i32
    return %c0_i32, %c0_i32_0 : i32, i32
  }
  func.func @transform_1(%arg0: i32) -> (i32, i32) {
    %c0_i32 = arith.constant 0 : i32
    %c0_i32_0 = arith.constant 0 : i32
    %c0_i32_1 = arith.constant 0 : i32
    return %c0_i32, %c0_i32_0 : i32, i32
  }
  func.func @transform_2(%arg0: i32) -> (i32, i32) {
    %c0_i32 = arith.constant 0 : i32
    %c0_i32_0 = arith.constant 0 : i32
    %c0_i32_1 = arith.constant 0 : i32
    return %c0_i32, %c0_i32_0 : i32, i32
  }
}

</mosaic_0001>

<bundles_post_ra>
// kernel: tpu_custom_call.1
= control target key start
LH: loop header
LB: loop body
LE: loop exit
PB: predicated region body
PF: predicated region fallthrough
CT: control target
= control target key end

     0   :  { %v75_v1 = vmov 0   ;;  %s113_s0 = inlined_call_operand.vmem [shape: f32[8,1], index: 0, kind: input, shape index: {}]   ;;  %s114_s1 = inlined_call_operand.vmem [shape: f32[2,128], index: 1, kind: input, shape index: {}]   ;;  %s115_s2 = inlined_call_operand.hbm [shape: f32[8,128], index: 2, kind: output, shape index: {}]  }
   0x1   :  { %v12_v0 = vld [vmem:[%s113_s0] sm:$0xff]  ;;  %50 = vset.pattern.permute.xlu0 %v75_v1 }
   0x2   :  { %7 = vsyncpa [#allocation3], 0  ;;  %17 = vperm.xlu0 %50, %v12_v0   ;;  %v46_v2 = vld [vmem:[%s114_s1] ss:$0 sm:$0xff]  ;;  %v47_v3 = vld [vmem:[%s114_s1 + $0x1] ss:$0 sm:$0xff] }
   0x3   :  { %s76_s15 = smov [#allocation2]  }
   0x4   :  { %s38_s16 = sshll.u32 %s76_s15, 4  ;;  %s39_s16 = int_to_ptr.vmem [resolvable:$true] %s38_s16 }
   0x5   :  { %s51_s0 = scalar_lea.vmem %s39_s16, 128  ;;  %p56_p1 = scmp.lt.s32.totalorder %s39_s16, %s39_s16 }
   0x6   :  { %p52_p0 = scmp.ne.s32.totalorder %s39_s16, %s51_s0  ;;  %p57_p2 = scmp.lt.s32.totalorder %s51_s0, %s51_s0 }
   0x8   :  { %p58_p3 = por %p57_p2, %p56_p1 }
   0xa   :  { %p59_p4 = pnand %p58_p3, %p52_p0 }
  0x81   :  { %v18_v4 = vpop.permute.xlu0 %17 }
  0x82   :  { %v24_v5 = vmul.f32 %v46_v2, %v18_v4 }
  0x84   :  { %v29_v6 = vadd.f32 %v47_v3, %v24_v5 }
  0x86   :  { %v30_v7 = vmax.f32 %v29_v6, 0.0 }
  0x88   :  { %31 = vst [vmem:[#allocation2] sm:$0xff] %v30_v7 }
  0x89   :  { %62 = shalt.err (!%p59_p4)
}
  0x8a   :  { %s63_s19 = scalar_lea.hbm %s115_s2, 128 }
  0x8b   :  { %p64_p5 = scmp.ne.s32.totalorder %s115_s2, %s63_s19  ;;  %p67_p6 = scmp.lt.u32.totalorder %s63_s19, %s115_s2 }
  0x8d   :  { %p69_p7 = pnand %p67_p6, %p64_p5 }
  0x8f   :  { %72 = shalt.err (!%p69_p7)
}
  0x90   :  { %41 = dma.vmem_to_hbm [thread:$0]  %s39_s16, 128, %s115_s2, [#allocation3]  }
  0x91   :  { %73 = dma.done.wait [#allocation3], 128  }
  0x92   :  { %74 = vsyncadd [#allocation3], 4294967168 }
  0x93   :  { %45 = vsyncpa [#allocation3], 1 }

</bundles_post_ra>
